<compile_context>
chip_gen: v6e
topology: v6e:2x2x1
jax: 0.10.0
libtpu: 0.0.40
codegen_flags: <defaults>
</compile_context>

<pallas_src>
import jax
import jax.numpy as jnp
from jax import lax
from jax.experimental import pallas as pl
from jax.experimental.pallas import tpu as pltpu


def _round_up(x, m):
    return ((x + m - 1) // m) * m


def _pick_batch_tile(N, L):
    """Batch elements per grid step.

    Targets ~128 (v5e) / ~256 (v6e, v7x) MXU rows per step, keeps N % TB == 0,
    and caps TB so the grid has >= 2 steps when N >= 2 (so both v7x TensorCores
    get work under dimension_semantics=('parallel',))."""
    try:
        kind = jax.devices()[0].device_kind.lower()
    except Exception:
        kind = ""
    m_target = 128 if ("v5 lite" in kind or "v5e" in kind) else 256
    cap = max(1, -(-m_target // max(L, 1)))       # ceil(m_target / L)
    if N >= 2:
        cap = min(cap, N // 2)
    cap = max(cap, 1)
    tb = 1
    for cand in range(1, cap + 1):
        if N % cand == 0:
            tb = cand
    return tb


# ----------------------------------------------------------------------------
# Fused kernel (all TemporalBlocks + GAP1d + Linear)
# ----------------------------------------------------------------------------
def _make_fused_kernel(cfgs, *, ks, PAL, TB, L, Cmax):
    """Ref order:
      x (TB,L,Cin0) f32 |
      per layer: w1 (ks*Cin,nf) bf16, b1 (1,nf) f32, w2 (ks*nf,nf) bf16, b2 (1,nf) f32,
                 [wd (Cin,nf) bf16, bd (1,nf) f32]   (only if Cin != nf) |
      lin_w (nf_last,c_out_pad) bf16 | lin_b (1,c_out_pad) f32 |
      out (TB,c_out_pad) f32 | scratch: (TB, PAL+L, Cmax) f32
    """

    def kernel(*refs):
        it = iter(refs)
        x_ref = next(it)
        params = []
        for c in cfgs:
            w1, b1, w2, b2 = next(it), next(it), next(it), next(it)
            wd, bd = (next(it), next(it)) if c["has_ds"] else (None, None)
            params.append((w1, b1, w2, b2, wd, bd))
        lin_w_ref = next(it)
        lin_b_ref = next(it)
        out_ref = next(it)
        scr = next(it)

        # Causal pad rows: zeroed once per grid step (megacore-safe), never
        # overwritten afterwards — the conv only stores into the data rows.
        if PAL > 0:
            scr[:, :PAL, :] = jnp.zeros((TB, PAL, Cmax), jnp.float32)

        def causal_conv(h, C, w_ref, b_ref, d):
            """Dilated causal conv.  h: (TB*L, C) f32 -> (TB*L, nf) f32.

            Writes h once into the per-batch padded scratch, reads the ks taps
            as shifted ref slices, K-packs them along channels and runs one
            bf16 MXU matmul against the (ks*C, nf) packed weight."""
            scr[:, PAL:, :C] = h.reshape(TB, L, C)
            parts = []
            for k in range(ks):
                s = (ks - 1 - k) * d          # causal shift of tap k (s <= PAL)
                parts.append(scr[:, PAL - s:PAL - s + L, :C].reshape(TB * L, C))
            lhs = parts[0] if ks == 1 else jnp.concatenate(parts, axis=-1)
            lhs = lhs.astype(jnp.bfloat16)    # single cast per conv
            return jnp.dot(lhs, w_ref[...],
                           preferred_element_type=jnp.float32) + b_ref[...]

        h = x_ref[...].reshape(TB * L, cfgs[0]["cin"])        # (TB*L, Cin0) f32
        for c, (w1, b1, w2, b2, wd, bd) in zip(cfgs, params):
            d = c["dilation"]
            h1 = jnp.maximum(causal_conv(h, c["cin"], w1, b1, d), 0.0)
            h2 = jnp.maximum(causal_conv(h1, c["nf"], w2, b2, d), 0.0)
            if c["has_ds"]:                   # 1x1-conv residual (Cin != nf)
                res = jnp.dot(h.astype(jnp.bfloat16), wd[...],
                              preferred_element_type=jnp.float32) + bd[...]
            else:                             # identity residual: skip the matmul
                res = h
            h = jnp.maximum(h2 + res, 0.0)    # (TB*L, nf) f32

        # GAP1d (mean over time; sublane reduce) + Linear, per batch element.
        # TB is tiny (1..4), so this static loop is a handful of row stores,
        # each lane-dense over the padded c_out.
        inv_l = 1.0 / L
        for b in range(TB):
            fb = jnp.sum(h[b * L:(b + 1) * L, :], axis=0, keepdims=True) * inv_l
            out_ref[b:b + 1, :] = (
                jnp.dot(fb.astype(jnp.bfloat16), lin_w_ref[...],
                        preferred_element_type=jnp.float32) + lin_b_ref[...])

    return kernel


# ----------------------------------------------------------------------------
# One-time parameter re-layout (hoisted out of the forward path)
# ----------------------------------------------------------------------------
def prepare_tcn_params(blocks, lin_w, lin_b, *, ks, c_out):
    c_out_pad = _round_up(c_out, 128)        # lane-dense output store
    cfgs, flat = [], []
    for blk in blocks:
        w1, b1, w2, b2 = blk["w1"], blk["b1"], blk["w2"], blk["b2"]
        nf, ni = int(w1.shape[0]), int(w1.shape[1])
        has_ds = blk["wd"] is not None
        cfgs.append(dict(cin=ni, nf=nf, dilation=int(blk["dilation"]), has_ds=has_ds))
        # K-packed conv weights: (nf, Cin, ks) -> (ks, Cin, nf) -> (ks*Cin, nf);
        # row block k multiplies h[t - (ks-1-k)*dilation].
        flat.append(jnp.transpose(w1, (2, 1, 0)).reshape(ks * ni, nf)
                    .astype(jnp.bfloat16))
        flat.append(b1.reshape(1, nf).astype(jnp.float32))
        flat.append(jnp.transpose(w2, (2, 1, 0)).reshape(ks * nf, nf)
                    .astype(jnp.bfloat16))
        flat.append(b2.reshape(1, nf).astype(jnp.float32))
        if has_ds:
            flat.append(blk["wd"].T.astype(jnp.bfloat16))                # (ni, nf)
            flat.append(blk["bd"].reshape(1, nf).astype(jnp.float32))
    nf_last = cfgs[-1]["nf"]
    lw = jnp.zeros((nf_last, c_out_pad), jnp.bfloat16).at[:, :c_out].set(
        lin_w.T.astype(jnp.bfloat16))
    lb = jnp.zeros((1, c_out_pad), jnp.float32).at[:, :c_out].set(
        lin_b.reshape(1, -1).astype(jnp.float32))
    flat += [lw, lb]
    flat = tuple(jax.device_put(f) for f in flat)
    return dict(cfgs=cfgs, flat=flat, ks=ks, c_out=c_out, c_out_pad=c_out_pad)


# ----------------------------------------------------------------------------
# Explicit VMEM budget (scoped defaults are 16/32 MiB; compute what we need)
# ----------------------------------------------------------------------------
def _vmem_limit_bytes(cfgs, *, ks, TB, L, PAL, Cmax, c_in, c_out_pad):
    def padded(shape, itemsize):
        lead = 1
        for s in shape[:-2]:
            lead *= int(s)
        sub = 8 if itemsize == 4 else 16
        return lead * _round_up(int(shape[-2]), sub) * _round_up(int(shape[-1]), 128) * itemsize

    est = 2 * padded((TB, L, c_in), 4)                 # input block (double-buffered)
    for c in cfgs:
        est += 2 * (padded((ks * c["cin"], c["nf"]), 2) + padded((1, c["nf"]), 4)
                    + padded((ks * c["nf"], c["nf"]), 2) + padded((1, c["nf"]), 4))
        if c["has_ds"]:
            est += 2 * (padded((c["cin"], c["nf"]), 2) + padded((1, c["nf"]), 4))
    est += 2 * (padded((cfgs[-1]["nf"], c_out_pad), 2) + padded((1, c_out_pad), 4))
    est += 2 * padded((TB, c_out_pad), 4)              # output block
    est += padded((TB, PAL + L, Cmax), 4)              # shared conv scratch
    # Headroom for compiler-internal temporaries / spills.
    return int(max(32 << 20, min(2 * est + (8 << 20), 100 << 20)))


# ----------------------------------------------------------------------------
# Forward
# ----------------------------------------------------------------------------
def tcn_forward(prep, x_ncl):
    """x_ncl: (N, C_in, L) float32 (PyTorch layout). Returns (N, c_out)."""
    cfgs, ks = prep["cfgs"], prep["ks"]
    c_out, c_out_pad = prep["c_out"], prep["c_out_pad"]
    N, c_in, L = x_ncl.shape
    assert c_in == cfgs[0]["cin"]
    assert L % 8 == 0, "time length must be a multiple of 8 for this tiling"

    max_pad = max((ks - 1) * c["dilation"] for c in cfgs)
    PAL = _round_up(max_pad, 8)              # causal zero-pad rows (8-aligned)
    Cmax = max(max(c["cin"], c["nf"]) for c in cfgs)
    TB = _pick_batch_tile(N, L)              # batch elements per grid step
    G = N // TB

    # Single layout pass NCL -> NLC.  No pad / reshape materialization: the
    # causal padding lives only in the VMEM scratch inside the kernel.
    x_nlc = jnp.transpose(x_ncl, (0, 2, 1)).astype(jnp.float32)

    kernel = _make_fused_kernel(cfgs, ks=ks, PAL=PAL, TB=TB, L=L, Cmax=Cmax)

    def const(shape):
        # Grid-invariant input (whole array is the block, fetched once).
        return pl.BlockSpec(shape, lambda b: (0, 0))

    in_specs = [pl.BlockSpec((TB, L, c_in), lambda b: (b, 0, 0))]
    for c in cfgs:
        in_specs += [const((ks * c["cin"], c["nf"])), const((1, c["nf"])),
                     const((ks * c["nf"], c["nf"])), const((1, c["nf"]))]
        if c["has_ds"]:
            in_specs += [const((c["cin"], c["nf"])), const((1, c["nf"]))]
    nf_last = cfgs[-1]["nf"]
    in_specs += [const((nf_last, c_out_pad)), const((1, c_out_pad))]

    out = pl.pallas_call(
        kernel,
        out_shape=jax.ShapeDtypeStruct((G, TB, c_out_pad), jnp.float32),
        grid=(G,),
        in_specs=in_specs,
        out_specs=pl.BlockSpec((None, TB, c_out_pad), lambda b: (b, 0, 0)),
        scratch_shapes=[pltpu.VMEM((TB, PAL + L, Cmax), jnp.float32)],
        compiler_params=pltpu.CompilerParams(
            dimension_semantics=("parallel",),
            vmem_limit_bytes=_vmem_limit_bytes(
                cfgs, ks=ks, TB=TB, L=L, PAL=PAL, Cmax=Cmax,
                c_in=c_in, c_out_pad=c_out_pad)),
    )(x_nlc, *prep["flat"])
    return out.reshape(N, c_out_pad)[:, :c_out]


# ----------------------------------------------------------------------------
# Parameter construction (deterministic; weight_norm reparametrization applied)
# ----------------------------------------------------------------------------
def weight_norm_effective(v, g):
    """weight_norm: W = g * v / ||v||, norm over all dims except dim 0."""
    norm = jnp.sqrt(jnp.sum(v * v, axis=(1, 2), keepdims=True))
    return g[:, None, None] * v / norm


def init_tcn_params(key, c_in, c_out, layers, ks):
    blocks = []
    for i, nf in enumerate(layers):
        ni = c_in if i == 0 else layers[i - 1]
        dilation = 2 ** i
        key, k1, k2, k3, k4, k5, k6 = jax.random.split(key, 7)
        v1 = 0.01 * jax.random.normal(k1, (nf, ni, ks), jnp.float32)
        g1 = jnp.sqrt(jnp.sum(v1 * v1, axis=(1, 2)))
        w1 = weight_norm_effective(v1, g1)
        b1 = 0.01 * jax.random.normal(k2, (nf,), jnp.float32)
        v2 = 0.01 * jax.random.normal(k3, (nf, nf, ks), jnp.float32)
        g2 = jnp.sqrt(jnp.sum(v2 * v2, axis=(1, 2)))
        w2 = weight_norm_effective(v2, g2)
        b2 = 0.01 * jax.random.normal(k4, (nf,), jnp.float32)
        if ni != nf:
            wd = 0.01 * jax.random.normal(k5, (nf, ni), jnp.float32)
            bd = 0.01 * jax.random.normal(k6, (nf,), jnp.float32)
        else:
            wd, bd = None, None                       # identity residual in the module
        blocks.append(dict(w1=w1, b1=b1, w2=w2, b2=b2, wd=wd, bd=bd,
                           dilation=dilation))
    key, kl1, kl2 = jax.random.split(key, 3)
    lin_w = 0.01 * jax.random.normal(kl1, (c_out, layers[-1]), jnp.float32)
    lin_b = 0.01 * jax.random.normal(kl2, (c_out,), jnp.float32)
    return blocks, lin_w, lin_b


# ----------------------------------------------------------------------------
# Pure-JAX reference (lax.conv) for correctness check
# ----------------------------------------------------------------------------
def ref_forward(x_ncl, blocks, lin_w, lin_b, *, ks):
    def cconv(inp, w, b, dil, pad):
        out = lax.conv_general_dilated(
            inp, w, window_strides=(1,), padding=[(pad, 0)],
            rhs_dilation=(dil,), dimension_numbers=("NCH", "OIH", "NCH"))
        return out + b[None, :, None]

    h = x_ncl
    for blk in blocks:
        d = blk["dilation"]
        p = (ks - 1) * d
        o = jax.nn.relu(cconv(h, blk["w1"], blk["b1"], d, p))
        o = jax.nn.relu(cconv(o, blk["w2"], blk["b2"], d, p))
        if blk["wd"] is not None:
            res = cconv(h, blk["wd"][:, :, None], blk["bd"], 1, 0)
        else:
            res = h
        h = jax.nn.relu(o + res)
    feat = jnp.mean(h, axis=2)                        # GAP1d
    return feat @ lin_w.T + lin_b


# ----------------------------------------------------------------------------
if __name__ == "__main__":
    # Small, module-consistent shapes: batch=2, c_in=4, seq_len=16,
    # layers=[8, 8, 16] (exercises both the 1x1-conv and identity residual
    # paths and dilations 1/2/4), ks=3, c_out=3.  With TB capped so grid >= 2,
    # this also exercises the multi-step (megacore-shardable) grid path.
    N, C_IN, L = 2, 4, 16
    C_OUT = 3
    LAYERS = [8, 8, 16]
    KS = 3

    key = jax.random.PRNGKey(0)
    key, kx = jax.random.split(key)
    x = jax.random.normal(kx, (N, C_IN, L), jnp.float32)     # NCL, like PyTorch

    blocks, lin_w, lin_b = init_tcn_params(key, C_IN, C_OUT, LAYERS, KS)
    prep = prepare_tcn_params(blocks, lin_w, lin_b, ks=KS, c_out=C_OUT)

    out = jax.block_until_ready(tcn_forward(prep, x))
    ref = jax.block_until_ready(ref_forward(x, blocks, lin_w, lin_b, ks=KS))

    assert out.shape == (N, C_OUT), out.shape
    assert jnp.allclose(out, ref, rtol=5e-2, atol=5e-4), (
        f"max abs diff {jnp.max(jnp.abs(out - ref))}")

    print("KERNEL_OK")
</pallas_src>

<mosaic_0001>
module attributes {stable_mosaic.version = 11 : i64} {
  func.func @kernel(%arg0: i32, %arg1: memref<1x16x4xf32, #tpu.memory_space<vmem>>, %arg2: memref<12x8xbf16, #tpu.memory_space<vmem>>, %arg3: memref<1x8xf32, #tpu.memory_space<vmem>>, %arg4: memref<24x8xbf16, #tpu.memory_space<vmem>>, %arg5: memref<1x8xf32, #tpu.memory_space<vmem>>, %arg6: memref<4x8xbf16, #tpu.memory_space<vmem>>, %arg7: memref<1x8xf32, #tpu.memory_space<vmem>>, %arg8: memref<24x8xbf16, #tpu.memory_space<vmem>>, %arg9: memref<1x8xf32, #tpu.memory_space<vmem>>, %arg10: memref<24x8xbf16, #tpu.memory_space<vmem>>, %arg11: memref<1x8xf32, #tpu.memory_space<vmem>>, %arg12: memref<24x16xbf16, #tpu.memory_space<vmem>>, %arg13: memref<1x16xf32, #tpu.memory_space<vmem>>, %arg14: memref<48x16xbf16, #tpu.memory_space<vmem>>, %arg15: memref<1x16xf32, #tpu.memory_space<vmem>>, %arg16: memref<8x16xbf16, #tpu.memory_space<vmem>>, %arg17: memref<1x16xf32, #tpu.memory_space<vmem>>, %arg18: memref<16x128xbf16, #tpu.memory_space<vmem>>, %arg19: memref<1x128xf32, #tpu.memory_space<vmem>>, %arg20: memref<1x1x128xf32, #tpu.memory_space<vmem>>, %arg21: memref<1x24x16xf32, #tpu.memory_space<vmem>>) attributes {dimension_semantics = [#tpu.dimension_semantics<parallel>], iteration_bounds = array<i64: 2>, scalar_prefetch = 0 : i64, scratch_operands = 1 : i64, tpu.core_type = #tpu.core_type<tc>, window_params = [{transform_indices = @transform_0, window_bounds = array<i64: 1, 16, 4>}, {pipeline_mode = #tpu.pipeline_mode<synchronous>, transform_indices = @transform_1, window_bounds = array<i64: 12, 8>}, {pipeline_mode = #tpu.pipeline_mode<synchronous>, transform_indices = @transform_2, window_bounds = array<i64: 1, 8>}, {pipeline_mode = #tpu.pipeline_mode<synchronous>, transform_indices = @transform_3, window_bounds = array<i64: 24, 8>}, {pipeline_mode = #tpu.pipeline_mode<synchronous>, transform_indices = @transform_4, window_bounds = array<i64: 1, 8>}, {pipeline_mode = #tpu.pipeline_mode<synchronous>, transform_indices = @transform_5, window_bounds = array<i64: 4, 8>}, {pipeline_mode = #tpu.pipeline_mode<synchronous>, transform_indices = @transform_6, window_bounds = array<i64: 1, 8>}, {pipeline_mode = #tpu.pipeline_mode<synchronous>, transform_indices = @transform_7, window_bounds = array<i64: 24, 8>}, {pipeline_mode = #tpu.pipeline_mode<synchronous>, transform_indices = @transform_8, window_bounds = array<i64: 1, 8>}, {pipeline_mode = #tpu.pipeline_mode<synchronous>, transform_indices = @transform_9, window_bounds = array<i64: 24, 8>}, {pipeline_mode = #tpu.pipeline_mode<synchronous>, transform_indices = @transform_10, window_bounds = array<i64: 1, 8>}, {pipeline_mode = #tpu.pipeline_mode<synchronous>, transform_indices = @transform_11, window_bounds = array<i64: 24, 16>}, {pipeline_mode = #tpu.pipeline_mode<synchronous>, transform_indices = @transform_12, window_bounds = array<i64: 1, 16>}, {pipeline_mode = #tpu.pipeline_mode<synchronous>, transform_indices = @transform_13, window_bounds = array<i64: 48, 16>}, {pipeline_mode = #tpu.pipeline_mode<synchronous>, transform_indices = @transform_14, window_bounds = array<i64: 1, 16>}, {pipeline_mode = #tpu.pipeline_mode<synchronous>, transform_indices = @transform_15, window_bounds = array<i64: 8, 16>}, {pipeline_mode = #tpu.pipeline_mode<synchronous>, transform_indices = @transform_16, window_bounds = array<i64: 1, 16>}, {pipeline_mode = #tpu.pipeline_mode<synchronous>, transform_indices = @transform_17, window_bounds = array<i64: 16, 128>}, {pipeline_mode = #tpu.pipeline_mode<synchronous>, transform_indices = @transform_18, window_bounds = array<i64: 1, 128>}, {transform_indices = @transform_19, window_bounds = array<i64: 1, 1, 128>}]} {
    %cst = arith.constant 0.000000e+00 : f32
    %0 = vector.broadcast %cst : f32 to vector<1x8x16xf32>
    %c0 = arith.constant 0 : index
    %c0_0 = arith.constant 0 : index
    %c0_1 = arith.constant 0 : index
    %1 = vector.load %arg21[%c0, %c0_0, %c0_1] : memref<1x24x16xf32, #tpu.memory_space<vmem>>, vector<1x8x16xf32>
    tpu.vector_store %arg21[%c0, %c0_0, %c0_1], %0 {strides = array<i32>} : memref<1x24x16xf32, #tpu.memory_space<vmem>>, vector<1x8x16xf32>,
    %c0_2 = arith.constant 0 : index
    %c0_3 = arith.constant 0 : index
    %c0_4 = arith.constant 0 : index
    %2 = vector.load %arg1[%c0_2, %c0_3, %c0_4] : memref<1x16x4xf32, #tpu.memory_space<vmem>>, vector<1x16x4xf32>
    %3 = vector.shape_cast %2 : vector<1x16x4xf32> to vector<16x4xf32>
    %4 = vector.shape_cast %3 : vector<16x4xf32> to vector<1x16x4xf32>
    %c0_5 = arith.constant 0 : index
    %c8 = arith.constant 8 : index
    %c0_6 = arith.constant 0 : index
    %5 = vector.load %arg21[%c0_5, %c8, %c0_6] : memref<1x24x16xf32, #tpu.memory_space<vmem>>, vector<1x16x4xf32>
    tpu.vector_store %arg21[%c0_5, %c8, %c0_6], %4 {strides = array<i32>} : memref<1x24x16xf32, #tpu.memory_space<vmem>>, vector<1x16x4xf32>,
    %c0_7 = arith.constant 0 : index
    %c6 = arith.constant 6 : index
    %c0_8 = arith.constant 0 : index
    %6 = vector.load %arg21[%c0_7, %c6, %c0_8] : memref<1x24x16xf32, #tpu.memory_space<vmem>>, vector<1x16x4xf32>
    %7 = vector.shape_cast %6 : vector<1x16x4xf32> to vector<16x4xf32>
    %c0_9 = arith.constant 0 : index
    %c7 = arith.constant 7 : index
    %c0_10 = arith.constant 0 : index
    %8 = vector.load %arg21[%c0_9, %c7, %c0_10] : memref<1x24x16xf32, #tpu.memory_space<vmem>>, vector<1x16x4xf32>
    %9 = vector.shape_cast %8 : vector<1x16x4xf32> to vector<16x4xf32>
    %c0_11 = arith.constant 0 : index
    %c8_12 = arith.constant 8 : index
    %c0_13 = arith.constant 0 : index
    %10 = vector.load %arg21[%c0_11, %c8_12, %c0_13] : memref<1x24x16xf32, #tpu.memory_space<vmem>>, vector<1x16x4xf32>
    %11 = vector.shape_cast %10 : vector<1x16x4xf32> to vector<16x4xf32>
    %12 = tpu.concatenate %7, %9, %11 in 1 : vector<16x4xf32>, vector<16x4xf32>, vector<16x4xf32> -> vector<16x12xf32>
    %13 = arith.truncf %12 : vector<16x12xf32> to vector<16x12xbf16>
    %c0_14 = arith.constant 0 : index
    %c0_15 = arith.constant 0 : index
    %14 = vector.load %arg2[%c0_14, %c0_15] : memref<12x8xbf16, #tpu.memory_space<vmem>>, vector<12x8xbf16>
    %cst_16 = arith.constant dense<0.000000e+00> : vector<16x8xf32>
    %15 = tpu.matmul %13, %14, %cst_16 {dimension_numbers = #tpu.dot_dimension_numbers<[1], [0], [0], [1], [0, 0, 1, 1], [], []>} : vector<16x12xbf16>, vector<12x8xbf16>, vector<16x8xf32> -> vector<16x8xf32>
    %c0_17 = arith.constant 0 : index
    %c0_18 = arith.constant 0 : index
    %16 = vector.load %arg3[%c0_17, %c0_18] : memref<1x8xf32, #tpu.memory_space<vmem>>, vector<1x8xf32>
    %17 = vector.broadcast %16 : vector<1x8xf32> to vector<16x8xf32>
    %18 = arith.addf %15, %17 : vector<16x8xf32>
    %cst_19 = arith.constant 0.000000e+00 : f32
    %19 = vector.broadcast %cst_19 : f32 to vector<16x8xf32>
    %20 = arith.maximumf %18, %19 : vector<16x8xf32>
    %21 = vector.shape_cast %20 : vector<16x8xf32> to vector<1x16x8xf32>
    %c0_20 = arith.constant 0 : index
    %c8_21 = arith.constant 8 : index
    %c0_22 = arith.constant 0 : index
    %22 = vector.load %arg21[%c0_20, %c8_21, %c0_22] : memref<1x24x16xf32, #tpu.memory_space<vmem>>, vector<1x16x8xf32>
    tpu.vector_store %arg21[%c0_20, %c8_21, %c0_22], %21 {strides = array<i32>} : memref<1x24x16xf32, #tpu.memory_space<vmem>>, vector<1x16x8xf32>,
    %c0_23 = arith.constant 0 : index
    %c6_24 = arith.constant 6 : index
    %c0_25 = arith.constant 0 : index
    %23 = vector.load %arg21[%c0_23, %c6_24, %c0_25] : memref<1x24x16xf32, #tpu.memory_space<vmem>>, vector<1x16x8xf32>
    %24 = vector.shape_cast %23 : vector<1x16x8xf32> to vector<16x8xf32>
    %c0_26 = arith.constant 0 : index
    %c7_27 = arith.constant 7 : index
    %c0_28 = arith.constant 0 : index
    %25 = vector.load %arg21[%c0_26, %c7_27, %c0_28] : memref<1x24x16xf32, #tpu.memory_space<vmem>>, vector<1x16x8xf32>
    %26 = vector.shape_cast %25 : vector<1x16x8xf32> to vector<16x8xf32>
    %c0_29 = arith.constant 0 : index
    %c8_30 = arith.constant 8 : index
    %c0_31 = arith.constant 0 : index
    %27 = vector.load %arg21[%c0_29, %c8_30, %c0_31] : memref<1x24x16xf32, #tpu.memory_space<vmem>>, vector<1x16x8xf32>
    %28 = vector.shape_cast %27 : vector<1x16x8xf32> to vector<16x8xf32>
    %29 = tpu.concatenate %24, %26, %28 in 1 : vector<16x8xf32>, vector<16x8xf32>, vector<16x8xf32> -> vector<16x24xf32>
    %30 = arith.truncf %29 : vector<16x24xf32> to vector<16x24xbf16>
    %c0_32 = arith.constant 0 : index
    %c0_33 = arith.constant 0 : index
    %31 = vector.load %arg4[%c0_32, %c0_33] : memref<24x8xbf16, #tpu.memory_space<vmem>>, vector<24x8xbf16>
    %cst_34 = arith.constant dense<0.000000e+00> : vector<16x8xf32>
    %32 = tpu.matmul %30, %31, %cst_34 {dimension_numbers = #tpu.dot_dimension_numbers<[1], [0], [0], [1], [0, 0, 1, 1], [], []>} : vector<16x24xbf16>, vector<24x8xbf16>, vector<16x8xf32> -> vector<16x8xf32>
    %c0_35 = arith.constant 0 : index
    %c0_36 = arith.constant 0 : index
    %33 = vector.load %arg5[%c0_35, %c0_36] : memref<1x8xf32, #tpu.memory_space<vmem>>, vector<1x8xf32>
    %34 = vector.broadcast %33 : vector<1x8xf32> to vector<16x8xf32>
    %35 = arith.addf %32, %34 : vector<16x8xf32>
    %cst_37 = arith.constant 0.000000e+00 : f32
    %36 = vector.broadcast %cst_37 : f32 to vector<16x8xf32>
    %37 = arith.maximumf %35, %36 : vector<16x8xf32>
    %38 = arith.truncf %3 : vector<16x4xf32> to vector<16x4xbf16>
    %c0_38 = arith.constant 0 : index
    %c0_39 = arith.constant 0 : index
    %39 = vector.load %arg6[%c0_38, %c0_39] : memref<4x8xbf16, #tpu.memory_space<vmem>>, vector<4x8xbf16>
    %cst_40 = arith.constant dense<0.000000e+00> : vector<16x8xf32>
    %40 = tpu.matmul %38, %39, %cst_40 {dimension_numbers = #tpu.dot_dimension_numbers<[1], [0], [0], [1], [0, 0, 1, 1], [], []>} : vector<16x4xbf16>, vector<4x8xbf16>, vector<16x8xf32> -> vector<16x8xf32>
    %c0_41 = arith.constant 0 : index
    %c0_42 = arith.constant 0 : index
    %41 = vector.load %arg7[%c0_41, %c0_42] : memref<1x8xf32, #tpu.memory_space<vmem>>, vector<1x8xf32>
    %42 = vector.broadcast %41 : vector<1x8xf32> to vector<16x8xf32>
    %43 = arith.addf %40, %42 : vector<16x8xf32>
    %44 = arith.addf %37, %43 : vector<16x8xf32>
    %cst_43 = arith.constant 0.000000e+00 : f32
    %45 = vector.broadcast %cst_43 : f32 to vector<16x8xf32>
    %46 = arith.maximumf %44, %45 : vector<16x8xf32>
    %47 = vector.shape_cast %46 : vector<16x8xf32> to vector<1x16x8xf32>
    %c0_44 = arith.constant 0 : index
    %c8_45 = arith.constant 8 : index
    %c0_46 = arith.constant 0 : index
    %48 = vector.load %arg21[%c0_44, %c8_45, %c0_46] : memref<1x24x16xf32, #tpu.memory_space<vmem>>, vector<1x16x8xf32>
    tpu.vector_store %arg21[%c0_44, %c8_45, %c0_46], %47 {strides = array<i32>} : memref<1x24x16xf32, #tpu.memory_space<vmem>>, vector<1x16x8xf32>,
    %c0_47 = arith.constant 0 : index
    %c4 = arith.constant 4 : index
    %c0_48 = arith.constant 0 : index
    %49 = vector.load %arg21[%c0_47, %c4, %c0_48] : memref<1x24x16xf32, #tpu.memory_space<vmem>>, vector<1x16x8xf32>
    %50 = vector.shape_cast %49 : vector<1x16x8xf32> to vector<16x8xf32>
    %c0_49 = arith.constant 0 : index
    %c6_50 = arith.constant 6 : index
    %c0_51 = arith.constant 0 : index
    %51 = vector.load %arg21[%c0_49, %c6_50, %c0_51] : memref<1x24x16xf32, #tpu.memory_space<vmem>>, vector<1x16x8xf32>
    %52 = vector.shape_cast %51 : vector<1x16x8xf32> to vector<16x8xf32>
    %c0_52 = arith.constant 0 : index
    %c8_53 = arith.constant 8 : index
    %c0_54 = arith.constant 0 : index
    %53 = vector.load %arg21[%c0_52, %c8_53, %c0_54] : memref<1x24x16xf32, #tpu.memory_space<vmem>>, vector<1x16x8xf32>
    %54 = vector.shape_cast %53 : vector<1x16x8xf32> to vector<16x8xf32>
    %55 = tpu.concatenate %50, %52, %54 in 1 : vector<16x8xf32>, vector<16x8xf32>, vector<16x8xf32> -> vector<16x24xf32>
    %56 = arith.truncf %55 : vector<16x24xf32> to vector<16x24xbf16>
    %c0_55 = arith.constant 0 : index
    %c0_56 = arith.constant 0 : index
    %57 = vector.load %arg8[%c0_55, %c0_56] : memref<24x8xbf16, #tpu.memory_space<vmem>>, vector<24x8xbf16>
    %cst_57 = arith.constant dense<0.000000e+00> : vector<16x8xf32>
    %58 = tpu.matmul %56, %57, %cst_57 {dimension_numbers = #tpu.dot_dimension_numbers<[1], [0], [0], [1], [0, 0, 1, 1], [], []>} : vector<16x24xbf16>, vector<24x8xbf16>, vector<16x8xf32> -> vector<16x8xf32>
    %c0_58 = arith.constant 0 : index
    %c0_59 = arith.constant 0 : index
    %59 = vector.load %arg9[%c0_58, %c0_59] : memref<1x8xf32, #tpu.memory_space<vmem>>, vector<1x8xf32>
    %60 = vector.broadcast %59 : vector<1x8xf32> to vector<16x8xf32>
    %61 = arith.addf %58, %60 : vector<16x8xf32>
    %cst_60 = arith.constant 0.000000e+00 : f32
    %62 = vector.broadcast %cst_60 : f32 to vector<16x8xf32>
    %63 = arith.maximumf %61, %62 : vector<16x8xf32>
    %64 = vector.shape_cast %63 : vector<16x8xf32> to vector<1x16x8xf32>
    %c0_61 = arith.constant 0 : index
    %c8_62 = arith.constant 8 : index
    %c0_63 = arith.constant 0 : index
    %65 = vector.load %arg21[%c0_61, %c8_62, %c0_63] : memref<1x24x16xf32, #tpu.memory_space<vmem>>, vector<1x16x8xf32>
    tpu.vector_store %arg21[%c0_61, %c8_62, %c0_63], %64 {strides = array<i32>} : memref<1x24x16xf32, #tpu.memory_space<vmem>>, vector<1x16x8xf32>,
    %c0_64 = arith.constant 0 : index
    %c4_65 = arith.constant 4 : index
    %c0_66 = arith.constant 0 : index
    %66 = vector.load %arg21[%c0_64, %c4_65, %c0_66] : memref<1x24x16xf32, #tpu.memory_space<vmem>>, vector<1x16x8xf32>
    %67 = vector.shape_cast %66 : vector<1x16x8xf32> to vector<16x8xf32>
    %c0_67 = arith.constant 0 : index
    %c6_68 = arith.constant 6 : index
    %c0_69 = arith.constant 0 : index
    %68 = vector.load %arg21[%c0_67, %c6_68, %c0_69] : memref<1x24x16xf32, #tpu.memory_space<vmem>>, vector<1x16x8xf32>
    %69 = vector.shape_cast %68 : vector<1x16x8xf32> to vector<16x8xf32>
    %c0_70 = arith.constant 0 : index
    %c8_71 = arith.constant 8 : index
    %c0_72 = arith.constant 0 : index
    %70 = vector.load %arg21[%c0_70, %c8_71, %c0_72] : memref<1x24x16xf32, #tpu.memory_space<vmem>>, vector<1x16x8xf32>
    %71 = vector.shape_cast %70 : vector<1x16x8xf32> to vector<16x8xf32>
    %72 = tpu.concatenate %67, %69, %71 in 1 : vector<16x8xf32>, vector<16x8xf32>, vector<16x8xf32> -> vector<16x24xf32>
    %73 = arith.truncf %72 : vector<16x24xf32> to vector<16x24xbf16>
    %c0_73 = arith.constant 0 : index
    %c0_74 = arith.constant 0 : index
    %74 = vector.load %arg10[%c0_73, %c0_74] : memref<24x8xbf16, #tpu.memory_space<vmem>>, vector<24x8xbf16>
    %cst_75 = arith.constant dense<0.000000e+00> : vector<16x8xf32>
    %75 = tpu.matmul %73, %74, %cst_75 {dimension_numbers = #tpu.dot_dimension_numbers<[1], [0], [0], [1], [0, 0, 1, 1], [], []>} : vector<16x24xbf16>, vector<24x8xbf16>, vector<16x8xf32> -> vector<16x8xf32>
    %c0_76 = arith.constant 0 : index
    %c0_77 = arith.constant 0 : index
    %76 = vector.load %arg11[%c0_76, %c0_77] : memref<1x8xf32, #tpu.memory_space<vmem>>, vector<1x8xf32>
    %77 = vector.broadcast %76 : vector<1x8xf32> to vector<16x8xf32>
    %78 = arith.addf %75, %77 : vector<16x8xf32>
    %cst_78 = arith.constant 0.000000e+00 : f32
    %79 = vector.broadcast %cst_78 : f32 to vector<16x8xf32>
    %80 = arith.maximumf %78, %79 : vector<16x8xf32>
    %81 = arith.addf %80, %46 : vector<16x8xf32>
    %cst_79 = arith.constant 0.000000e+00 : f32
    %82 = vector.broadcast %cst_79 : f32 to vector<16x8xf32>
    %83 = arith.maximumf %81, %82 : vector<16x8xf32>
    %84 = vector.shape_cast %83 : vector<16x8xf32> to vector<1x16x8xf32>
    %c0_80 = arith.constant 0 : index
    %c8_81 = arith.constant 8 : index
    %c0_82 = arith.constant 0 : index
    %85 = vector.load %arg21[%c0_80, %c8_81, %c0_82] : memref<1x24x16xf32, #tpu.memory_space<vmem>>, vector<1x16x8xf32>
    tpu.vector_store %arg21[%c0_80, %c8_81, %c0_82], %84 {strides = array<i32>} : memref<1x24x16xf32, #tpu.memory_space<vmem>>, vector<1x16x8xf32>,
    %c0_83 = arith.constant 0 : index
    %c0_84 = arith.constant 0 : index
    %c0_85 = arith.constant 0 : index
    %86 = vector.load %arg21[%c0_83, %c0_84, %c0_85] : memref<1x24x16xf32, #tpu.memory_space<vmem>>, vector<1x16x8xf32>
    %87 = vector.shape_cast %86 : vector<1x16x8xf32> to vector<16x8xf32>
    %c0_86 = arith.constant 0 : index
    %c4_87 = arith.constant 4 : index
    %c0_88 = arith.constant 0 : index
    %88 = vector.load %arg21[%c0_86, %c4_87, %c0_88] : memref<1x24x16xf32, #tpu.memory_space<vmem>>, vector<1x16x8xf32>
    %89 = vector.shape_cast %88 : vector<1x16x8xf32> to vector<16x8xf32>
    %c0_89 = arith.constant 0 : index
    %c8_90 = arith.constant 8 : index
    %c0_91 = arith.constant 0 : index
    %90 = vector.load %arg21[%c0_89, %c8_90, %c0_91] : memref<1x24x16xf32, #tpu.memory_space<vmem>>, vector<1x16x8xf32>
    %91 = vector.shape_cast %90 : vector<1x16x8xf32> to vector<16x8xf32>
    %92 = tpu.concatenate %87, %89, %91 in 1 : vector<16x8xf32>, vector<16x8xf32>, vector<16x8xf32> -> vector<16x24xf32>
    %93 = arith.truncf %92 : vector<16x24xf32> to vector<16x24xbf16>
    %c0_92 = arith.constant 0 : index
    %c0_93 = arith.constant 0 : index
    %94 = vector.load %arg12[%c0_92, %c0_93] : memref<24x16xbf16, #tpu.memory_space<vmem>>, vector<24x16xbf16>
    %cst_94 = arith.constant dense<0.000000e+00> : vector<16x16xf32>
    %95 = tpu.matmul %93, %94, %cst_94 {dimension_numbers = #tpu.dot_dimension_numbers<[1], [0], [0], [1], [0, 0, 1, 1], [], []>} : vector<16x24xbf16>, vector<24x16xbf16>, vector<16x16xf32> -> vector<16x16xf32>
    %c0_95 = arith.constant 0 : index
    %c0_96 = arith.constant 0 : index
    %96 = vector.load %arg13[%c0_95, %c0_96] : memref<1x16xf32, #tpu.memory_space<vmem>>, vector<1x16xf32>
    %97 = vector.broadcast %96 : vector<1x16xf32> to vector<16x16xf32>
    %98 = arith.addf %95, %97 : vector<16x16xf32>
    %cst_97 = arith.constant 0.000000e+00 : f32
    %99 = vector.broadcast %cst_97 : f32 to vector<16x16xf32>
    %100 = arith.maximumf %98, %99 : vector<16x16xf32>
    %101 = vector.shape_cast %100 : vector<16x16xf32> to vector<1x16x16xf32>
    %c0_98 = arith.constant 0 : index
    %c8_99 = arith.constant 8 : index
    %c0_100 = arith.constant 0 : index
    %102 = vector.load %arg21[%c0_98, %c8_99, %c0_100] : memref<1x24x16xf32, #tpu.memory_space<vmem>>, vector<1x16x16xf32>
    tpu.vector_store %arg21[%c0_98, %c8_99, %c0_100], %101 {strides = array<i32>} : memref<1x24x16xf32, #tpu.memory_space<vmem>>, vector<1x16x16xf32>,
    %c0_101 = arith.constant 0 : index
    %c0_102 = arith.constant 0 : index
    %c0_103 = arith.constant 0 : index
    %103 = vector.load %arg21[%c0_101, %c0_102, %c0_103] : memref<1x24x16xf32, #tpu.memory_space<vmem>>, vector<1x16x16xf32>
    %104 = vector.shape_cast %103 : vector<1x16x16xf32> to vector<16x16xf32>
    %c0_104 = arith.constant 0 : index
    %c4_105 = arith.constant 4 : index
    %c0_106 = arith.constant 0 : index
    %105 = vector.load %arg21[%c0_104, %c4_105, %c0_106] : memref<1x24x16xf32, #tpu.memory_space<vmem>>, vector<1x16x16xf32>
    %106 = vector.shape_cast %105 : vector<1x16x16xf32> to vector<16x16xf32>
    %c0_107 = arith.constant 0 : index
    %c8_108 = arith.constant 8 : index
    %c0_109 = arith.constant 0 : index
    %107 = vector.load %arg21[%c0_107, %c8_108, %c0_109] : memref<1x24x16xf32, #tpu.memory_space<vmem>>, vector<1x16x16xf32>
    %108 = vector.shape_cast %107 : vector<1x16x16xf32> to vector<16x16xf32>
    %109 = tpu.concatenate %104, %106, %108 in 1 : vector<16x16xf32>, vector<16x16xf32>, vector<16x16xf32> -> vector<16x48xf32>
    %110 = arith.truncf %109 : vector<16x48xf32> to vector<16x48xbf16>
    %c0_110 = arith.constant 0 : index
    %c0_111 = arith.constant 0 : index
    %111 = vector.load %arg14[%c0_110, %c0_111] : memref<48x16xbf16, #tpu.memory_space<vmem>>, vector<48x16xbf16>
    %cst_112 = arith.constant dense<0.000000e+00> : vector<16x16xf32>
    %112 = tpu.matmul %110, %111, %cst_112 {dimension_numbers = #tpu.dot_dimension_numbers<[1], [0], [0], [1], [0, 0, 1, 1], [], []>} : vector<16x48xbf16>, vector<48x16xbf16>, vector<16x16xf32> -> vector<16x16xf32>
    %c0_113 = arith.constant 0 : index
    %c0_114 = arith.constant 0 : index
    %113 = vector.load %arg15[%c0_113, %c0_114] : memref<1x16xf32, #tpu.memory_space<vmem>>, vector<1x16xf32>
    %114 = vector.broadcast %113 : vector<1x16xf32> to vector<16x16xf32>
    %115 = arith.addf %112, %114 : vector<16x16xf32>
    %cst_115 = arith.constant 0.000000e+00 : f32
    %116 = vector.broadcast %cst_115 : f32 to vector<16x16xf32>
    %117 = arith.maximumf %115, %116 : vector<16x16xf32>
    %118 = arith.truncf %83 : vector<16x8xf32> to vector<16x8xbf16>
    %c0_116 = arith.constant 0 : index
    %c0_117 = arith.constant 0 : index
    %119 = vector.load %arg16[%c0_116, %c0_117] : memref<8x16xbf16, #tpu.memory_space<vmem>>, vector<8x16xbf16>
    %cst_118 = arith.constant dense<0.000000e+00> : vector<16x16xf32>
    %120 = tpu.matmul %118, %119, %cst_118 {dimension_numbers = #tpu.dot_dimension_numbers<[1], [0], [0], [1], [0, 0, 1, 1], [], []>} : vector<16x8xbf16>, vector<8x16xbf16>, vector<16x16xf32> -> vector<16x16xf32>
    %c0_119 = arith.constant 0 : index
    %c0_120 = arith.constant 0 : index
    %121 = vector.load %arg17[%c0_119, %c0_120] : memref<1x16xf32, #tpu.memory_space<vmem>>, vector<1x16xf32>
    %122 = vector.broadcast %121 : vector<1x16xf32> to vector<16x16xf32>
    %123 = arith.addf %120, %122 : vector<16x16xf32>
    %124 = arith.addf %117, %123 : vector<16x16xf32>
    %cst_121 = arith.constant 0.000000e+00 : f32
    %125 = vector.broadcast %cst_121 : f32 to vector<16x16xf32>
    %126 = arith.maximumf %124, %125 : vector<16x16xf32>
    %cst_122 = arith.constant dense<0.000000e+00> : vector<16xf32>
    %127 = vector.multi_reduction <add>, %126, %cst_122 [0] : vector<16x16xf32> to vector<16xf32>
    %128 = vector.shape_cast %127 : vector<16xf32> to vector<1x16xf32>
    %cst_123 = arith.constant 6.250000e-02 : f32
    %129 = vector.broadcast %cst_123 : f32 to vector<1x16xf32>
    %130 = arith.mulf %128, %129 : vector<1x16xf32>
    %131 = arith.truncf %130 : vector<1x16xf32> to vector<1x16xbf16>
    %c0_124 = arith.constant 0 : index
    %c0_125 = arith.constant 0 : index
    %132 = vector.load %arg18[%c0_124, %c0_125] : memref<16x128xbf16, #tpu.memory_space<vmem>>, vector<16x128xbf16>
    %cst_126 = arith.constant dense<0.000000e+00> : vector<1x128xf32>
    %133 = tpu.matmul %131, %132, %cst_126 {dimension_numbers = #tpu.dot_dimension_numbers<[1], [0], [0], [1], [0, 0, 1, 1], [], []>} : vector<1x16xbf16>, vector<16x128xbf16>, vector<1x128xf32> -> vector<1x128xf32>
    %c0_127 = arith.constant 0 : index
    %c0_128 = arith.constant 0 : index
    %134 = vector.load %arg19[%c0_127, %c0_128] : memref<1x128xf32, #tpu.memory_space<vmem>>, vector<1x128xf32>
    %135 = arith.addf %133, %134 : vector<1x128xf32>
    %c0_129 = arith.constant 0 : index
    %c0_130 = arith.constant 0 : index
    %c0_131 = arith.constant 0 : index
    %136 = vector.load %arg20[%c0_129, %c0_130, %c0_131] : memref<1x1x128xf32, #tpu.memory_space<vmem>>, vector<1x1x128xf32>
    %137 = vector.shape_cast %136 : vector<1x1x128xf32> to vector<1x128xf32>
    %138 = vector.shape_cast %135 : vector<1x128xf32> to vector<1x1x128xf32>
    tpu.vector_store %arg20[%c0_129, %c0_130, %c0_131], %138 {strides = array<i32>} : memref<1x1x128xf32, #tpu.memory_space<vmem>>, vector<1x1x128xf32>,
    return
  }
  func.func @transform_0(%arg0: i32) -> (i32, i32, i32) {
    %c0_i32 = arith.constant 0 : i32
    %c0_i32_0 = arith.constant 0 : i32
    %c0_i32_1 = arith.constant 0 : i32
    return %arg0, %c0_i32, %c0_i32_0 : i32, i32, i32
  }
  func.func @transform_1(%arg0: i32) -> (i32, i32) {
    %c0_i32 = arith.constant 0 : i32
    %c0_i32_0 = arith.constant 0 : i32
    %c0_i32_1 = arith.constant 0 : i32
    return %c0_i32, %c0_i32_0 : i32, i32
  }
  func.func @transform_2(%arg0: i32) -> (i32, i32) {
    %c0_i32 = arith.constant 0 : i32
    %c0_i32_0 = arith.constant 0 : i32
    %c0_i32_1 = arith.constant 0 : i32
    return %c0_i32, %c0_i32_0 : i32, i32
  }
  func.func @transform_3(%arg0: i32) -> (i32, i32) {
    %c0_i32 = arith.constant 0 : i32
    %c0_i32_0 = arith.constant 0 : i32
    %c0_i32_1 = arith.constant 0 : i32
    return %c0_i32, %c0_i32_0 : i32, i32
  }
  func.func @transform_4(%arg0: i32) -> (i32, i32) {
    %c0_i32 = arith.constant 0 : i32
    %c0_i32_0 = arith.constant 0 : i32
    %c0_i32_1 = arith.constant 0 : i32
    return %c0_i32, %c0_i32_0 : i32, i32
  }
  func.func @transform_5(%arg0: i32) -> (i32, i32) {
    %c0_i32 = arith.constant 0 : i32
    %c0_i32_0 = arith.constant 0 : i32
    %c0_i32_1 = arith.constant 0 : i32
    return %c0_i32, %c0_i32_0 : i32, i32
  }
  func.func @transform_6(%arg0: i32) -> (i32, i32) {
    %c0_i32 = arith.constant 0 : i32
    %c0_i32_0 = arith.constant 0 : i32
    %c0_i32_1 = arith.constant 0 : i32
    return %c0_i32, %c0_i32_0 : i32, i32
  }
  func.func @transform_7(%arg0: i32) -> (i32, i32) {
    %c0_i32 = arith.constant 0 : i32
    %c0_i32_0 = arith.constant 0 : i32
    %c0_i32_1 = arith.constant 0 : i32
    return %c0_i32, %c0_i32_0 : i32, i32
  }
  func.func @transform_8(%arg0: i32) -> (i32, i32) {
    %c0_i32 = arith.constant 0 : i32
    %c0_i32_0 = arith.constant 0 : i32
    %c0_i32_1 = arith.constant 0 : i32
    return %c0_i32, %c0_i32_0 : i32, i32
  }
  func.func @transform_9(%arg0: i32) -> (i32, i32) {
    %c0_i32 = arith.constant 0 : i32
    %c0_i32_0 = arith.constant 0 : i32
    %c0_i32_1 = arith.constant 0 : i32
    return %c0_i32, %c0_i32_0 : i32, i32
  }
  func.func @transform_10(%arg0: i32) -> (i32, i32) {
    %c0_i32 = arith.constant 0 : i32
    %c0_i32_0 = arith.constant 0 : i32
    %c0_i32_1 = arith.constant 0 : i32
    return %c0_i32, %c0_i32_0 : i32, i32
  }
  func.func @transform_11(%arg0: i32) -> (i32, i32) {
    %c0_i32 = arith.constant 0 : i32
    %c0_i32_0 = arith.constant 0 : i32
    %c0_i32_1 = arith.constant 0 : i32
    return %c0_i32, %c0_i32_0 : i32, i32
  }
  func.func @transform_12(%arg0: i32) -> (i32, i32) {
    %c0_i32 = arith.constant 0 : i32
    %c0_i32_0 = arith.constant 0 : i32
    %c0_i32_1 = arith.constant 0 : i32
    return %c0_i32, %c0_i32_0 : i32, i32
  }
  func.func @transform_13(%arg0: i32) -> (i32, i32) {
    %c0_i32 = arith.constant 0 : i32
    %c0_i32_0 = arith.constant 0 : i32
    %c0_i32_1 = arith.constant 0 : i32
    return %c0_i32, %c0_i32_0 : i32, i32
  }
  func.func @transform_14(%arg0: i32) -> (i32, i32) {
    %c0_i32 = arith.constant 0 : i32
    %c0_i32_0 = arith.constant 0 : i32
    %c0_i32_1 = arith.constant 0 : i32
    return %c0_i32, %c0_i32_0 : i32, i32
  }
  func.func @transform_15(%arg0: i32) -> (i32, i32) {
    %c0_i32 = arith.constant 0 : i32
    %c0_i32_0 = arith.constant 0 : i32
    %c0_i32_1 = arith.constant 0 : i32
    return %c0_i32, %c0_i32_0 : i32, i32
  }
  func.func @transform_16(%arg0: i32) -> (i32, i32) {
    %c0_i32 = arith.constant 0 : i32
    %c0_i32_0 = arith.constant 0 : i32
    %c0_i32_1 = arith.constant 0 : i32
    return %c0_i32, %c0_i32_0 : i32, i32
  }
  func.func @transform_17(%arg0: i32) -> (i32, i32) {
    %c0_i32 = arith.constant 0 : i32
    %c0_i32_0 = arith.constant 0 : i32
    %c0_i32_1 = arith.constant 0 : i32
    return %c0_i32, %c0_i32_0 : i32, i32
  }
  func.func @transform_18(%arg0: i32) -> (i32, i32) {
    %c0_i32 = arith.constant 0 : i32
    %c0_i32_0 = arith.constant 0 : i32
    %c0_i32_1 = arith.constant 0 : i32
    return %c0_i32, %c0_i32_0 : i32, i32
  }
  func.func @transform_19(%arg0: i32) -> (i32, i32, i32) {
    %c0_i32 = arith.constant 0 : i32
    %c0_i32_0 = arith.constant 0 : i32
    %c0_i32_1 = arith.constant 0 : i32
    return %arg0, %c0_i32, %c0_i32_0 : i32, i32, i32
  }
}

</mosaic_0001>

<bundles_post_ra>
// kernel: tpu_custom_call.1
= control target key start
LH: loop header
LB: loop body
LE: loop exit
PB: predicated region body
PF: predicated region fallthrough
CT: control target
= control target key end

     0   :  { %s2153_s0 = inlined_call_operand.vmem [shape: f32[2,16,4], index: 0, kind: input, shape index: {}]   ;;  %s2154_s1 = inlined_call_operand.vmem [shape: bf16[12,8], index: 1, kind: input, shape index: {}]   ;;  %s2155_s2 = inlined_call_operand.vmem [shape: f32[1,8], index: 2, kind: input, shape index: {}]   ;;  %s2156_s3 = inlined_call_operand.vmem [shape: bf16[24,8], index: 3, kind: input, shape index: {}]   ;;  %s2157_s4 = inlined_call_operand.vmem [shape: f32[1,8], index: 4, kind: input, shape index: {}]   ;;  %s2158_s5 = inlined_call_operand.vmem [shape: bf16[4,8], index: 5, kind: input, shape index: {}]   ;;  %s2159_s6 = inlined_call_operand.vmem [shape: f32[1,8], index: 6, kind: input, shape index: {}]   ;;  %s2160_s7 = inlined_call_operand.vmem [shape: bf16[24,8], index: 7, kind: input, shape index: {}]   ;;  %s2161_s8 = inlined_call_operand.vmem [shape: f32[1,8], index: 8, kind: input, shape index: {}]   ;;  %s2162_s9 = inlined_call_operand.vmem [shape: bf16[24,8], index: 9, kind: input, shape index: {}]   ;;  %s2163_s10 = inlined_call_operand.vmem [shape: f32[1,8], index: 10, kind: input, shape index: {}]   ;;  %s2164_s11 = inlined_call_operand.vmem [shape: bf16[24,16], index: 11, kind: input, shape index: {}]   ;;  %s2165_s12 = inlined_call_operand.vmem [shape: f32[1,16], index: 12, kind: input, shape index: {}]   ;;  %s2166_s13 = inlined_call_operand.vmem [shape: bf16[48,16], index: 13, kind: input, shape index: {}]   ;;  %s2167_s14 = inlined_call_operand.vmem [shape: f32[1,16], index: 14, kind: input, shape index: {}]   ;;  %s2168_s15 = inlined_call_operand.vmem [shape: bf16[8,16], index: 15, kind: input, shape index: {}]   ;;  %s2169_s16 = inlined_call_operand.vmem [shape: f32[1,16], index: 16, kind: input, shape index: {}]   ;;  %s2170_s17 = inlined_call_operand.vmem [shape: bf16[16,128], index: 17, kind: input, shape index: {}]   ;;  %s2171_s18 = inlined_call_operand.vmem [shape: f32[1,128], index: 18, kind: input, shape index: {}]   ;;  %s2172_s19 = inlined_call_operand.hbm [shape: f32[2,1,128], index: 19, kind: output, shape index: {}]  }
   0x1   :  { %2177 = sst [smem:[#allocation9_spill]] %s2153_s0 }
   0x2   :  { %2178 = sst [smem:[#allocation10_spill]] %s2154_s1 }
   0x3   :  { %2179 = sst [smem:[#allocation11_spill]] %s2155_s2 }
   0x4   :  { %2180 = sst [smem:[#allocation12_spill]] %s2156_s3 }
   0x5   :  { %2181 = sst [smem:[#allocation13_spill]] %s2157_s4 }
   0x6   :  { %2182 = sst [smem:[#allocation14_spill]] %s2158_s5 }
   0x7   :  { %2183 = sst [smem:[#allocation15_spill]] %s2159_s6 }
   0x8   :  { %24 = vsyncpa [#allocation4], 0 }
   0x9   :  { %26 = vsyncpa [#allocation4 + $0x1], 0  ;;  %s1871_s0 = smov 0   ;;  %s1873_s30 = smov 0  }
   0xa   :  { %s1875_s20 = smov 0   ;;  %s1877_s21 = smov 0  }
   0xb LB: > { %2184 = sst [smem:[#allocation6_spill]] %s1758_s20  ;;  %s1892_s1 = sadd.s32 4294967295, %s1762_s21   ;;  %s1762_s21 = sphi %s1877_s21, %s2196_s21   ;;  %s1758_s20 = sphi %s1875_s20, %s2198_s20   ;;  %s1754_s30 = sphi %s1873_s30, %s2200_s30   ;;  %s1750_s0 = sphi %s1871_s0, %s2199_s0  }
   0xc   : > { %s1454_s22 = sadd.s32 4294967294, %s1762_s21   ;;  %s1896_s2 = sadd.s32 1, %s1762_s21  }
   0xd   : > { %2185 = sst [smem:[#allocation7_spill]] %s1896_s2  ;;  %s443_s23 = sadd.s32 1, %s1758_s20 }
   0xe   : > { %s440_s24 = ssub.s32 %s1762_s21, %s1896_s2  ;;  %p453_p0 = scmp.ne.s32.totalorder %s1758_s20, %s1754_s30 }
   0xf   : > { %p441_p1 = scmp.eq.s32.totalorder %s440_s24, 0  ;;  %p454_p2 = scmp.eq.s32.totalorder %s1892_s1, 1 }
  0x10   : > { %p459_p3 = scmp.ne.s32.totalorder %s1754_s30, %s1750_s0  ;;  %p460_p4 = scmp.eq.s32.totalorder %s1454_s22, 1 }
  0x11   : > { %s1907_s25 = scalar_select %p441_p1, %s1758_s20, %s443_s23  }
  0x12   : > { %p1909_p5 = por %p454_p2, %p453_p0  ;;  %p1913_p6 = por %p460_p4, %p459_p3 }
  0x13   : > { %2186 = sst [smem:[#allocation8_spill]] %s1907_s25  ;;  %p1457_p7 = scmp.ge.s32.totalorder %s1762_s21, 1 }
  0x14   : > { %p540_p8 = scmp.lt.s32.totalorder %s1762_s21, 3 }
  0x16   : > { %p541_p9 = pnand %p1457_p7, %p540_p8 }
  0x17   : > { %p595_p10 = scmp.lt.s32.totalorder (!%p541_p9), %s1892_s1, 1  ;;  %s2189_s23 = sld [smem:[#allocation9_spill]] (!%p541_p9) }
  0x18   : > { %544 = sbr.rel (%p541_p9) target bundleno = 2276 (0x8e4), region = 96  ;;  %s2190_s2 = sld [smem:[#allocation10_spill]] (!%p541_p9) }
  0x19   : > { %s1767_s20 = smov (!%p541_p9), 8   ;;  %s2193_s5 = sld [smem:[#allocation14_spill]] (!%p541_p9) }
  0x1a   : > { %s2194_s6 = sld [smem:[#allocation15_spill]] (!%p541_p9)  ;;  %s1490_s25 = sshll.u32 (!%p541_p9), %s1892_s1, 4 }
  0x1b   : > { %s2195_s4 = sld [smem:[#allocation13_spill]] (!%p541_p9) }
  0x1d   : > { %vm601_vm0 = vcmask 130048   ;;  %v1764_v0 = vmov 0.0   ;;  %s596_s27 = scalar_select %p595_p10, %s1892_s1, 1  ;;  %vm605_vm1 = vcmask 31744   ;;  %vm654_vm2 = vcmask 1045504  }
  0x1e   : > { %602 = vst.msk [vmem:[#allocation2] sm:$0xff] %vm601_vm0, %v1764_v0  ;;  %1518 = vmatprep.subr.bf16.mxu1 %v1764_v0  ;;  %1532 = vmatprep.subr.bf16.mxu0 %v1764_v0  ;;  %v1689_v3 = vld [vmem:[%s2190_s2] sm:$0x3f]   ;;  %vm1765_vm3 = vmmov 0   ;;  %vm632_vm4 = vcmask 64512   ;;  %vm650_vm5 = vcmask 97280  }
  0x1f   : > { %s1493_s28 = sshll.u32 %s596_s27, 4  ;;  %v656_v4 = vsel %vm654_vm2, %v1689_v3, 0  ;;  %1520 = vmatprep.mubr.msk.bf16.mxu1 %vm1765_vm3, %v1764_v0  ;;  %1534 = vmatprep.mubr.msk.bf16.mxu0 %vm1765_vm3, %v1764_v0  ;;  %s1766_s27 = smov 4   ;;  %vm753_vm6 = vcmask 1043456   ;;  %v801_v33 = vld [vmem:[%s2193_s5] sm:$0x3] }
  0x20   : > { %s599_s24 = scalar_lea.vmem %s2189_s23, %s1493_s28  ;;  %1519 = vmatpush3.bf16.msra.mxu1 %v656_v4  ;;  %s2191_s28 = sld [smem:[#allocation11_spill]]  ;;  %vm812_vm7 = vcmask 1041408   ;;  %vm749_vm8 = vcmask 195584   ;;  %v1692_v62 = vld [vmem:[%s2160_s7 + $0x8] ss:$0 sps:$4 sm:$0xff]   ;;  %vm1180_vm9 = vcmask 261120  }
  0x21   : > { %v1928_v1 = vld [vmem:[%s599_s24] sm:$0xff]  ;;  %v604_v2 = vld [vmem:[%s599_s24 + $0x8] sm:$0xff]  ;;  %1524 = vmatprep.subr.bf16.mxu1 %v1764_v0  ;;  %s2192_s23 = sld [smem:[#allocation12_spill]]  ;;  %v814_v36 = vsel %vm812_vm7, %v801_v33, 0  ;;  %v913_v63 = vsel %vm753_vm6, %v1692_v62, 0  ;;  %s1769_s2 = smov 32  }
  0x22   : > { %606 = vst.msk [vmem:[#allocation2 + $0x8] sm:$0xff] %vm605_vm1, %v1928_v1  ;;  %607 = vst.msk [vmem:[#allocation2 + $0x10] sm:$0xff] %vm605_vm1, %v604_v2  ;;  %1533 = vmatpush3.bf16.msra.mxu0 %v814_v36  ;;  %v800_v37 = vpack.c.bf16 %v604_v2, %v1928_v1  ;;  %v1467_v1 = vld [vmem:[%s2194_s6] ss:$0 sm:$0xff]  ;;  %vm1215_vm10 = vcmask 392192   ;;  %s1770_s1 = smov [#allocation3]  }
  0x23   : > { %1546 = vmatprep.subr.bf16.mxu0 %v1764_v0  ;;  %v1463_v2 = vld [vmem:[%s2195_s4] ss:$0 sm:$0xff]  ;;  %s2112_s4 = scalar_lea.hbm %s2172_s19, %s1490_s25  ;;  %s1706_s5 = sshll.u32 %s1770_s1, 4  ;;  %s1707_s5 = int_to_ptr.vmem [resolvable:$false] %s1706_s5 }
  0x24   : > { %s1708_s24 = scalar_lea.vmem %s1707_s5, 32 }
  0x25   : > { %1535 = vmatmul.mubr.msk.bf16.vlgmr.msra.gmra.mxu0 %vm605_vm1, %v800_v37  ;;  %v1694_v37 = vld [vmem:[%s2162_s9 + $0x8] ss:$0 sps:$4 sm:$0xff]  }
  0x26   : > { %v1460_v24 = vld [vmem:[%s2191_s28] ss:$0 sm:$0xff]  ;;  %1550 = vmatprep.mubr.msk.bf16.mxu0 %vm1765_vm3, %v1764_v0  ;;  %s1768_s28 = smov 16  }
  0x27   : > { %v1690_v31 = vld [vmem:[%s2192_s23 + $0x8] ss:$0 sps:$4 sm:$0xff]   ;;  %v1691_v38 = vld [vmem:[%s2192_s23] sm:$0xff]  }
  0x28   : > { %v755_v35 = vsel %vm753_vm6, %v1690_v31, 0 }
  0x29   : > { %v610_v5 = vld [vmem:[#allocation2 + $0x7] sm:$0xff]  ;;  %v611_v6 = vld [vmem:[#allocation2 + $0xf] sm:$0xff] }
  0x2a   : > { %v612_v7 = vld [vmem:[#allocation2 + $0x8] sm:$0xff]  ;;  %v1629_v8 = vpack.i.bf16 %v611_v6, %v610_v5  ;;  %v613_v9 = vld [vmem:[#allocation2 + $0x10] sm:$0xff] }
  0x2b   : > { %v1634_v10 = vpack.i.bf16 %v613_v9, %v612_v7  ;;  %v608_v14 = vld [vmem:[#allocation2 + $0x6] sm:$0xff]  ;;  %v609_v15 = vld [vmem:[#allocation2 + $0xe] sm:$0xff] }
  0x2c   : > { %1630 = vrot.lane.b32.xlu0 %v1629_v8, %s1766_s27 }
  0x30   : > { %1635 = vrot.lane.b32.xlu0 %v1634_v10, %s1767_s20 }
  0x9e   : > { %v1631_v11 = vpop.permute.xlu0 %1630 }
  0x9f   : > { %v1633_v12 = vunpack.i.h.bf16 %v1631_v11  ;;  %v1632_v13 = vunpack.i.l.bf16 %v1631_v11 }
  0xa1   : > { %v630_v19 = vsel %vm605_vm1, %v608_v14, %v1632_v13  ;;  %v631_v20 = vsel %vm605_vm1, %v609_v15, %v1633_v12 }
  0xa2   : > { %v1636_v16 = vpop.permute.xlu0 %1635 }
  0xa3   : > { %v1638_v17 = vunpack.i.h.bf16 %v1636_v16  ;;  %v1637_v18 = vunpack.i.l.bf16 %v1636_v16 }
  0xa5   : > { %v633_v21 = vsel %vm632_vm4, %v630_v19, %v1637_v18  ;;  %v634_v22 = vsel %vm632_vm4, %v631_v20, %v1638_v17  ;;  %v1693_v17 = vld [vmem:[%s2160_s7] sm:$0xff]  }
  0xa6   : > { %v635_v23 = vpack.c.bf16 %v634_v22, %v633_v21 }
  0xa8   : > { %1521 = vmatmul.mubr.msk.bf16.vlgmr.msra.gmra.mxu1 %vm650_vm5, %v635_v23 }
  0xa9   : > { %1528 = vmatprep.mubr.msk.bf16.mxu1 %vm1765_vm3, %v1764_v0  ;;  %1525 = vmatpush3.bf16.msra.mxu1 %v755_v35 }
  0xaa   : > { %1526 = vmatprep.subr.bf16.mxu1 %v1764_v0 }
  0xad   : > { %1527 = vmatpush3.bf16.msra.mxu1 %v1691_v38  ;;  %v1010_v38 = vsel %vm753_vm6, %v1694_v37, 0 }
  0xae   : > { %1538 = vmatprep.subr.bf16.mxu1 %v1764_v0  ;;  %1547 = vmatpush3.bf16.msra.mxu0 %v1010_v38 }
  0xaf   : > { %1548 = vmatprep.subr.bf16.mxu0 %v1764_v0 }
  0xe5   : > { %v850_v58 = vpop.f32.mrf.mxu0 }
  0xe6   : > { %v851_v4 = vadd.f32 %v1467_v1, %v850_v58 }
  0xe7   : > { %v1536_v59 = vpop.f32.mrf.mxu0 }
  0xe9   : > { %v853_v60 = vpop.f32.mrf.mxu0 }
  0xea   : > { %v854_v13 = vadd.f32 %v1467_v1, %v853_v60 }
  0xeb   : > { %v1537_v61 = vpop.f32.mrf.mxu0 }
 0x168   : > { %v692_v25 = vpop.f32.mrf.mxu1 }
 0x169   : > { %v693_v26 = vadd.f32 %v1460_v24, %v692_v25 }
 0x16a   : > { %v1522_v27 = vpop.f32.mrf.mxu1 }
 0x16b   : > { %v699_v28 = vmax.f32 %v693_v26, 0.0 }
 0x16c   : > { %v695_v29 = vpop.f32.mrf.mxu1 }
 0x16d   : > { %701 = vst.msk [vmem:[#allocation2 + $0x8] sm:$0xff] %vm632_vm4, %v699_v28  ;;  %v696_v30 = vadd.f32 %v1460_v24, %v695_v29 }
 0x16e   : > { %v1523_v32 = vpop.f32.mrf.mxu1 }
 0x16f   : > { %v700_v34 = vmax.f32 %v696_v30, 0.0 }
 0x171   : > { %702 = vst.msk [vmem:[#allocation2 + $0x10] sm:$0xff] %vm632_vm4, %v700_v34 }
 0x174   : > { %v705_v39 = vld [vmem:[#allocation2 + $0x7] sm:$0xff] }
 0x175   : > { %v707_v43 = vld [vmem:[#allocation2 + $0x8] sm:$0xff] }
 0x176   : > { %v703_v49 = vld [vmem:[#allocation2 + $0x6] sm:$0xff] }
 0x178   : > { %v706_v40 = vld [vmem:[#allocation2 + $0xf] sm:$0xff] }
 0x179   : > { %v1639_v41 = vpack.i.bf16 %v706_v40, %v705_v39  ;;  %v708_v42 = vld [vmem:[#allocation2 + $0x10] sm:$0xff]  ;;  %v1469_v39 = vld [vmem:[%s2161_s8] ss:$0 sm:$0xff] }
 0x17a   : > { %v1644_v44 = vpack.i.bf16 %v708_v42, %v707_v43  ;;  %v704_v50 = vld [vmem:[#allocation2 + $0xe] sm:$0xff] }
 0x17b   : > { %1640 = vrot.lane.b32.xlu1 %v1639_v41, %s1767_s20 }
 0x17f   : > { %1645 = vrot.lane.b32.xlu1 %v1644_v44, %s1768_s28 }
 0x1ed   : > { %v1641_v45 = vpop.permute.xlu1 %1640 }
 0x1ee   : > { %v1643_v46 = vunpack.i.h.bf16 %v1641_v45  ;;  %v1642_v47 = vunpack.i.l.bf16 %v1641_v45 }
 0x1f0   : > { %v725_v53 = vsel %vm632_vm4, %v703_v49, %v1642_v47  ;;  %v726_v54 = vsel %vm632_vm4, %v704_v50, %v1643_v46 }
 0x1f1   : > { %v1646_v48 = vpop.permute.xlu1 %1645 }
 0x1f2   : > { %v1648_v51 = vunpack.i.h.bf16 %v1646_v48  ;;  %v1647_v52 = vunpack.i.l.bf16 %v1646_v48  ;;  %v1695_v48 = vld [vmem:[%s2162_s9] sm:$0xff]  }
 0x1f3   : > { %1549 = vmatpush3.bf16.msra.mxu0 %v1695_v48 }
 0x1f4   : > { %v727_v55 = vsel %vm601_vm0, %v725_v53, %v1647_v52  ;;  %v728_v56 = vsel %vm601_vm0, %v726_v54, %v1648_v51  ;;  %1562 = vmatprep.subr.bf16.mxu0 %v1764_v0 }
 0x1f5   : > { %v729_v57 = vpack.c.bf16 %v728_v56, %v727_v55 }
 0x1f7   : > { %1529 = vmatmul.mubr.msk.bf16.vlgmr.msra.gmra.mxu1 %vm749_vm8, %v729_v57 }
 0x1f8   : > { %1542 = vmatprep.mubr.msk.bf16.mxu1 %vm1765_vm3, %v1764_v0  ;;  %1539 = vmatpush3.bf16.msra.mxu1 %v913_v63 }
 0x1f9   : > { %1540 = vmatprep.subr.bf16.mxu1 %v1764_v0 }
 0x1fc   : > { %1541 = vmatpush3.bf16.msra.mxu1 %v1693_v17 }
 0x1fd   : > { %1554 = vmatprep.subr.bf16.mxu1 %v1764_v0 }
 0x2b7   : > { %v791_v3 = vpop.f32.mrf.mxu1 }
 0x2b8   : > { %v792_v5 = vadd.f32 %v1463_v2, %v791_v3 }
 0x2b9   : > { %v1530_v6 = vpop.f32.mrf.mxu1 }
 0x2ba   : > { %v798_v7 = vmax.f32 %v792_v5, 0.0  ;;  %v1696_v5 = vld [vmem:[%s2164_s11 + $0x8] ss:$0 sps:$4 sm:$0xff]  }
 0x2bb   : > { %v794_v8 = vpop.f32.mrf.mxu1  ;;  %v1110_v6 = vsel %vm753_vm6, %v1696_v5, 0 }
 0x2bc   : > { %v1990_v9 = vadd.f32 %v851_v4, %v798_v7  ;;  %v795_v10 = vadd.f32 %v1463_v2, %v794_v8  ;;  %v1473_v7 = vld [vmem:[%s2163_s10] ss:$0 sm:$0xff] }
 0x2bd   : > { %v1531_v11 = vpop.f32.mrf.mxu1 }
 0x2be   : > { %v859_v12 = vmax.f32 %v1990_v9, 0.0  ;;  %v799_v14 = vmax.f32 %v795_v10, 0.0 }
 0x2c0   : > { %861 = vst.msk [vmem:[#allocation2 + $0x8] sm:$0xff] %vm632_vm4, %v859_v12  ;;  %v1996_v15 = vadd.f32 %v854_v13, %v799_v14 }
 0x2c2   : > { %v860_v16 = vmax.f32 %v1996_v15, 0.0 }
 0x2c4   : > { %862 = vst.msk [vmem:[#allocation2 + $0x10] sm:$0xff] %vm632_vm4, %v860_v16 }
 0x2c7   : > { %v867_v18 = vld [vmem:[#allocation2 + $0x8] sm:$0xff] }
 0x2c8   : > { %v865_v20 = vld [vmem:[#allocation2 + $0x6] sm:$0xff] }
 0x2c9   : > { %v863_v30 = vld [vmem:[#allocation2 + $0x4] sm:$0xff] }
 0x2cb   : > { %v868_v19 = vld [vmem:[#allocation2 + $0x10] sm:$0xff] }
 0x2cc   : > { %v866_v21 = vld [vmem:[#allocation2 + $0xe] sm:$0xff]  ;;  %v1654_v22 = vpack.i.bf16 %v868_v19, %v867_v18 }
 0x2cd   : > { %v1649_v23 = vpack.i.bf16 %v866_v21, %v865_v20  ;;  %v864_v31 = vld [vmem:[#allocation2 + $0xc] sm:$0xff] }
 0x2ce   : > { %1655 = vrot.lane.b32.xlu1 %v1654_v22, %s1768_s28 }
 0x2cf   : > { %1650 = vrot.lane.b32.xlu0 %v1649_v23, %s1767_s20 }
 0x340   : > { %v1656_v24 = vpop.permute.xlu1 %1655 }
 0x341   : > { %v1651_v25 = vpop.permute.xlu0 %1650  ;;  %v1658_v26 = vunpack.i.h.bf16 %v1656_v24  ;;  %v1657_v27 = vunpack.i.l.bf16 %v1656_v24  ;;  %v1697_v24 = vld [vmem:[%s2164_s11] sm:$0xff]  }
 0x342   : > { %v1653_v28 = vunpack.i.h.bf16 %v1651_v25  ;;  %v1652_v29 = vunpack.i.l.bf16 %v1651_v25 }
 0x344   : > { %v885_v32 = vsel %vm632_vm4, %v863_v30, %v1652_v29  ;;  %v886_v33 = vsel %vm632_vm4, %v864_v31, %v1653_v28 }
 0x345   : > { %v887_v34 = vsel %vm601_vm0, %v885_v32, %v1657_v27  ;;  %v888_v35 = vsel %vm601_vm0, %v886_v33, %v1658_v26 }
 0x346   : > { %v889_v36 = vpack.c.bf16 %v888_v35, %v887_v34  ;;  %v1263_v35 = vld [vmem:[%s2168_s15] sm:$0xf] }
 0x348   : > { %1543 = vmatmul.mubr.msk.bf16.vlgmr.msra.gmra.mxu1 %vm749_vm8, %v889_v36 }
 0x349   : > { %1558 = vmatprep.mubr.msk.bf16.mxu1 %vm1765_vm3, %v1764_v0  ;;  %1555 = vmatpush3.bf16.msra.mxu1 %v1110_v6 }
 0x34a   : > { %1556 = vmatprep.subr.bf16.mxu1 %v1764_v0 }
 0x34d   : > { %1557 = vmatpush3.bf16.msra.mxu1 %v1697_v24 }
 0x34e   : > { %1572 = vmatprep.subr.bf16.mxu1 %v1764_v0 }
 0x408   : > { %v949_v40 = vpop.f32.mrf.mxu1 }
 0x409   : > { %v950_v41 = vadd.f32 %v1469_v39, %v949_v40 }
 0x40a   : > { %v1544_v42 = vpop.f32.mrf.mxu1 }
 0x40b   : > { %v956_v43 = vmax.f32 %v950_v41, 0.0  ;;  %v1275_v41 = vsel %vm753_vm6, %v1263_v35, 0  ;;  %v1698_v42 = vld [vmem:[%s2166_s13 + $0x10] sm:$0xff]  }
 0x40c   : > { %v952_v44 = vpop.f32.mrf.mxu1 }
 0x40d   : > { %958 = vst.msk [vmem:[#allocation2 + $0x8] sm:$0xff] %vm632_vm4, %v956_v43  ;;  %v953_v45 = vadd.f32 %v1469_v39, %v952_v44  ;;  %v1699_v43 = vld [vmem:[%s2166_s13 + $0x8] sm:$0xff]   ;;  %v1477_v44 = vld [vmem:[%s2165_s12] ss:$0 sm:$0xff] }
 0x40e   : > { %v1545_v46 = vpop.f32.mrf.mxu1 }
 0x40f   : > { %v957_v47 = vmax.f32 %v953_v45, 0.0 }
 0x411   : > { %959 = vst.msk [vmem:[#allocation2 + $0x10] sm:$0xff] %vm632_vm4, %v957_v47 }
 0x414   : > { %v964_v49 = vld [vmem:[#allocation2 + $0x8] sm:$0xff] }
 0x415   : > { %v962_v51 = vld [vmem:[#allocation2 + $0x6] sm:$0xff] }
 0x416   : > { %v960_v61 = vld [vmem:[#allocation2 + $0x4] sm:$0xff] }
 0x418   : > { %v965_v50 = vld [vmem:[#allocation2 + $0x10] sm:$0xff] }
 0x419   : > { %v963_v52 = vld [vmem:[#allocation2 + $0xe] sm:$0xff]  ;;  %v1664_v53 = vpack.i.bf16 %v965_v50, %v964_v49 }
 0x41a   : > { %v1659_v54 = vpack.i.bf16 %v963_v52, %v962_v51  ;;  %v961_v62 = vld [vmem:[#allocation2 + $0xc] sm:$0xff] }
 0x41b   : > { %1665 = vrot.lane.b32.xlu1 %v1664_v53, %s1768_s28  ;;  %v1700_v53 = vld [vmem:[%s2166_s13] sm:$0xff]  }
 0x41c   : > { %1660 = vrot.lane.b32.xlu0 %v1659_v54, %s1767_s20 }
 0x48d   : > { %v1666_v55 = vpop.permute.xlu1 %1665 }
 0x48e   : > { %v1661_v56 = vpop.permute.xlu0 %1660  ;;  %v1668_v57 = vunpack.i.h.bf16 %v1666_v55  ;;  %v1667_v58 = vunpack.i.l.bf16 %v1666_v55 }
 0x48f   : > { %v1663_v59 = vunpack.i.h.bf16 %v1661_v56  ;;  %v1662_v60 = vunpack.i.l.bf16 %v1661_v56 }
 0x491   : > { %v982_v63 = vsel %vm632_vm4, %v960_v61, %v1662_v60  ;;  %v983_v1 = vsel %vm632_vm4, %v961_v62, %v1663_v59 }
 0x492   : > { %v984_v2 = vsel %vm601_vm0, %v982_v63, %v1667_v58  ;;  %v985_v3 = vsel %vm601_vm0, %v983_v1, %v1668_v57 }
 0x493   : > { %v986_v4 = vpack.c.bf16 %v985_v3, %v984_v2 }
 0x495   : > { %1551 = vmatmul.mubr.msk.bf16.vlgmr.msra.gmra.mxu0 %vm749_vm8, %v986_v4 }
 0x496   : > { %1568 = vmatprep.mubr.msk.bf16.mxu0 %vm1765_vm3, %v1764_v0  ;;  %1563 = vmatpush3.bf16.msra.mxu0 %v1698_v42 }
 0x497   : > { %1564 = vmatprep.subr.bf16.mxu0 %v1764_v0 }
 0x49a   : > { %1565 = vmatpush3.bf16.msra.mxu0 %v1699_v43 }
 0x49b   : > { %1566 = vmatprep.subr.bf16.mxu0 %v1764_v0 }
 0x49e   : > { %1567 = vmatpush3.bf16.msra.mxu0 %v1700_v53 }
 0x49f   : > { %1578 = vmatprep.subr.bf16.mxu0 %v1764_v0 }
 0x555   : > { %v1046_v8 = vpop.f32.mrf.mxu0 }
 0x556   : > { %v1047_v10 = vadd.f32 %v1473_v7, %v1046_v8 }
 0x557   : > { %v1552_v11 = vpop.f32.mrf.mxu0 }
 0x558   : > { %v1053_v13 = vmax.f32 %v1047_v10, 0.0 }
 0x559   : > { %v1049_v14 = vpop.f32.mrf.mxu0 }
 0x55a   : > { %v1055_v17 = vadd.f32 %v1053_v13, %v859_v12  ;;  %v1050_v18 = vadd.f32 %v1473_v7, %v1049_v14  ;;  %v1701_v14 = vld [vmem:[%s2170_s17] sm:$0xff]  }
 0x55b   : > { %v1553_v19 = vpop.f32.mrf.mxu0 }
 0x55c   : > { %v1057_v20 = vmax.f32 %v1055_v17, 0.0  ;;  %v1054_v21 = vmax.f32 %v1050_v18, 0.0  ;;  %v1481_v17 = vld [vmem:[%s2167_s14] ss:$0 sm:$0xff] }
 0x55d   : > { %v1486_v18 = vld [vmem:[%s2169_s16] ss:$0 sm:$0xff] }
 0x55e   : > { %1059 = vst.msk [vmem:[#allocation2 + $0x8] sm:$0xff] %vm632_vm4, %v1057_v20  ;;  %v1056_v22 = vadd.f32 %v1054_v21, %v860_v16  ;;  %v1061_v16 = vld [vmem:[#allocation2] sm:$0xff] }
 0x560   : > { %v1058_v23 = vmax.f32 %v1056_v22, 0.0 }
 0x562   : > { %v1262_v25 = vpack.c.bf16 %v1058_v23, %v1057_v20  ;;  %1060 = vst.msk [vmem:[#allocation2 + $0x10] sm:$0xff] %vm632_vm4, %v1058_v23 }
 0x565   : > { %v1062_v9 = vld [vmem:[#allocation2 + $0x8] sm:$0xff] }
 0x566   : > { %v1063_v26 = vld [vmem:[#allocation2 + $0x4] sm:$0xff] }
 0x569   : > { %v1065_v12 = vld [vmem:[#allocation2 + $0x10] sm:$0xff] }
 0x56a   : > { %v1064_v27 = vld [vmem:[#allocation2 + $0xc] sm:$0xff]  ;;  %v1674_v28 = vpack.i.bf16 %v1065_v12, %v1062_v9 }
 0x56b   : > { %v1669_v29 = vpack.i.bf16 %v1064_v27, %v1063_v26 }
 0x56c   : > { %1675 = vrot.lane.b32.xlu1 %v1674_v28, %s1768_s28 }
 0x56d   : > { %1670 = vrot.lane.b32.xlu0 %v1669_v29, %s1767_s20  ;;  %s593_s20 = sand.u32 1, %s1754_s30  }
 0x56e   : > { %s594_s29 = scalar_lea.vmem [#allocation3], %s593_s20 }
 0x56f   : > { %s1399_s22 = sshll.u32 %s594_s29, 4  ;;  %s2114_s22 = int_to_ptr.vmem [resolvable:$true] %s1399_s22 }
 0x570   : > { %p1709_p0 = scmp.lt.s32.totalorder %s2114_s22, %s1707_s5 }
 0x5de   : > { %v1676_v15 = vpop.permute.xlu1 %1675 }
 0x5df   : > { %v1671_v30 = vpop.permute.xlu0 %1670  ;;  %v1678_v31 = vunpack.i.h.bf16 %v1676_v15  ;;  %v1677_v32 = vunpack.i.l.bf16 %v1676_v15 }
 0x5e0   : > { %v1673_v33 = vunpack.i.h.bf16 %v1671_v30  ;;  %v1672_v34 = vunpack.i.l.bf16 %v1671_v30 }
 0x5e2   : > { %v1083_v36 = vsel %vm632_vm4, %v1062_v9, %v1673_v33  ;;  %v1082_v37 = vsel %vm632_vm4, %v1061_v16, %v1672_v34 }
 0x5e3   : > { %v1085_v38 = vsel %vm601_vm0, %v1083_v36, %v1678_v31  ;;  %v1084_v39 = vsel %vm601_vm0, %v1082_v37, %v1677_v32 }
 0x5e4   : > { %v1086_v40 = vpack.c.bf16 %v1085_v38, %v1084_v39  ;;  %v1335_v39 = vld [vmem:[%s2171_s18] sm:$0x1] }
 0x5e6   : > { %1559 = vmatmul.mubr.msk.bf16.vlgmr.msra.gmra.mxu1 %vm749_vm8, %v1086_v40 }
 0x5e7   : > { %1573 = vmatpush3.bf16.msra.mxu1 %v1275_v41  ;;  %1574 = vmatprep.mubr.msk.bf16.mxu1 %vm1765_vm3, %v1764_v0 }
 0x5ee   : > { %1575 = vmatmul.mubr.msk.bf16.vlgmr.msra.gmra.mxu1 %vm632_vm4, %v1262_v25 }
 0x6a6   : > { %v1146_v45 = vpop.f32.mrf.mxu1 }
 0x6a7   : > { %v1147_v46 = vadd.f32 %v1477_v44, %v1146_v45 }
 0x6a8   : > { %v1560_v47 = vpop.f32.mrf.mxu1 }
 0x6a9   : > { %v1153_v48 = vmax.f32 %v1147_v46, 0.0 }
 0x6aa   : > { %v1149_v49 = vpop.f32.mrf.mxu1 }
 0x6ab   : > { %1155 = vst.msk [vmem:[#allocation2 + $0x8] sm:$0xff] %vm601_vm0, %v1153_v48  ;;  %v1150_v50 = vadd.f32 %v1477_v44, %v1149_v49 }
 0x6ac   : > { %v1561_v51 = vpop.f32.mrf.mxu1 }
 0x6ad   : > { %v1154_v52 = vmax.f32 %v1150_v50, 0.0 }
 0x6ae   : > { %v1311_v54 = vpop.f32.mrf.mxu1 }
 0x6af   : > { %1156 = vst.msk [vmem:[#allocation2 + $0x10] sm:$0xff] %vm601_vm0, %v1154_v52  ;;  %v1312_v22 = vadd.f32 %v1486_v18, %v1311_v54 }
 0x6b0   : > { %v1576_v55 = vpop.f32.mrf.mxu1 }
 0x6b2   : > { %v1314_v56 = vpop.f32.mrf.mxu1  ;;  %v1158_v58 = vld [vmem:[#allocation2 + $0x8] sm:$0xff] }
 0x6b3   : > { %v1159_v60 = vld [vmem:[#allocation2 + $0x4] sm:$0xff]  ;;  %v1315_v12 = vadd.f32 %v1486_v18, %v1314_v56 }
 0x6b4   : > { %v1577_v57 = vpop.f32.mrf.mxu1 }
 0x6b6   : > { %v1161_v59 = vld [vmem:[#allocation2 + $0x10] sm:$0xff] }
 0x6b7   : > { %v1160_v61 = vld [vmem:[#allocation2 + $0xc] sm:$0xff]  ;;  %v1684_v62 = vpack.i.bf16 %v1161_v59, %v1158_v58 }
 0x6b8   : > { %v1679_v63 = vpack.i.bf16 %v1160_v61, %v1159_v60 }
 0x6b9   : > { %1685 = vrot.lane.b32.xlu1 %v1684_v62, %s1769_s2  ;;  %s1387_s2 = scalar_lea.sflag [#allocation4], %s593_s20 }
 0x6ba   : > { %1680 = vrot.lane.b32.xlu0 %v1679_v63, %s1768_s28  ;;  %s1702_s28 = scalar_lea.vmem %s2114_s22, 16 }
 0x6bb   : > { %p1703_p11 = scmp.ne.s32.totalorder %s2114_s22, %s1702_s28  ;;  %p1710_p1 = scmp.lt.s32.totalorder %s1708_s24, %s1702_s28 }
 0x6bd   : > { %p1704_p12 = pnand %p1703_p11, %p1909_p5  ;;  %p1711_p2 = por %p1710_p1, %p1709_p0 }
 0x6bf   : > { %p1705_p13 = pneg %p1704_p12 }
 0x6c1   : > { %p1712_p3 = pnand %p1711_p2, %p1705_p13 }
 0x72b   : > { %v1686_v1 = vpop.permute.xlu1 %1685 }
 0x72c   : > { %v1681_v2 = vpop.permute.xlu0 %1680  ;;  %v1688_v3 = vunpack.i.h.bf16 %v1686_v1  ;;  %v1687_v4 = vunpack.i.l.bf16 %v1686_v1 }
 0x72d   : > { %v1683_v5 = vunpack.i.h.bf16 %v1681_v2  ;;  %v1682_v6 = vunpack.i.l.bf16 %v1681_v2 }
 0x72f   : > { %v1179_v7 = vsel %vm601_vm0, %v1158_v58, %v1683_v5  ;;  %v1178_v8 = vsel %vm601_vm0, %v1061_v16, %v1682_v6 }
 0x730   : > { %v1182_v10 = vsel %vm1180_vm9, %v1179_v7, %v1688_v3  ;;  %v1181_v11 = vsel %vm1180_vm9, %v1178_v8, %v1687_v4 }
 0x731   : > { %v1183_v13 = vpack.c.bf16 %v1182_v10, %v1181_v11 }
 0x733   : > { %1569 = vmatmul.mubr.msk.bf16.vlgmr.msra.gmra.mxu0 %vm1215_vm10, %v1183_v13 }
 0x734   : > { %1580 = vmatprep.mubr.msk.bf16.mxu0 %vm1765_vm3, %v1764_v0  ;;  %1579 = vmatpush3.bf16.msra.mxu0 %v1701_v14 }
 0x7f3   : > { %v1253_v19 = vpop.f32.mrf.mxu0 }
 0x7f4   : > { %v1254_v20 = vadd.f32 %v1481_v17, %v1253_v19 }
 0x7f5   : > { %v1570_v21 = vpop.f32.mrf.mxu0 }
 0x7f6   : > { %v1260_v23 = vmax.f32 %v1254_v20, 0.0 }
 0x7f7   : > { %v1256_v24 = vpop.f32.mrf.mxu0 }
 0x7f8   : > { %v1318_v0 = vadd.f32 %v1312_v22, %v1260_v23  ;;  %v1257_v25 = vadd.f32 %v1481_v17, %v1256_v24 }
 0x7f9   : > { %v1571_v9 = vpop.f32.mrf.mxu0 }
 0x7fa   : > { %v1261_v26 = vmax.f32 %v1257_v25, 0.0  ;;  %v1320_v27 = vmax.f32 %v1318_v0, 0.0 }
 0x7fc   : > { %v1319_v28 = vadd.f32 %v1315_v12, %v1261_v26  ;;  %v1322_v15 = vsel %vm601_vm0, %v1320_v27, 0.0 }
 0x7fe   : > { %v1321_v29 = vmax.f32 %v1319_v28, 0.0 }
 0x800   : > { %v1323_v16 = vsel %vm601_vm0, %v1321_v29, 0.0 }
 0x801   : > { %v1324_v30 = vadd.f32 %v1323_v16, %v1322_v15 }
 0x803   : > { %v1325_v31 = vrot.slane %v1324_v30, 4 }
 0x805   : > { %v1326_v32 = vadd.f32 %v1325_v31, %v1324_v30 }
 0x807   : > { %v1327_v33 = vrot.slane %v1326_v32, 2 }
 0x809   : > { %v1328_v34 = vadd.f32 %v1327_v33, %v1326_v32 }
 0x80b   : > { %v1329_v35 = vrot.slane %v1328_v34, 1 }
 0x80d   : > { %v1330_v36 = vadd.f32 %v1329_v35, %v1328_v34 }
 0x80f   : > { %v1331_v37 = vmul.f32 0.0625, %v1330_v36 }
 0x811   : > { %v1332_v38 = vpack.c.bf16 %v1331_v37, %v1331_v37 }
 0x813   : > { %1581 = vmatmul.mubr.msk.bf16.vlgmr.msra.gmra.mxu0 %vm601_vm0, %v1332_v38 }
 0x8d3   : > { %v1379_v40 = vpop.f32.mrf.mxu0 }
 0x8d4   : > { %v1380_v41 = vadd.f32 %v1379_v40, %v1335_v39 }
 0x8d5   : > { %v1582_v42 = vpop.f32.mrf.mxu0 }
 0x8d6   : > { %1385 = vst [vmem:[%s594_s29] sm:$0x1] %v1380_v41 }
 0x8d7   : > { %v1382_v43 = vpop.f32.mrf.mxu0 }
 0x8d8   : > { %1715 = shalt.err (!%p1712_p3)
}
 0x8d9   : > { %s1716_s25 = scalar_lea.hbm %s2112_s4, 16  ;;  %s1720_s27 = scalar_lea.hbm %s2172_s19, 32 }
 0x8da   : > { %p1717_p4 = scmp.ne.s32.totalorder %s2112_s4, %s1716_s25  ;;  %p1721_p9 = scmp.lt.s32.totalorder %s2112_s4, %s2172_s19 }
 0x8db   : > { %p1722_p10 = scmp.lt.s32.totalorder %s1720_s27, %s1716_s25 }
 0x8dc   : > { %p1718_p7 = pnand %p1717_p4, %p1909_p5 }
 0x8dd   : > { %p1723_p11 = por %p1722_p10, %p1721_p9 }
 0x8de   : > { %p1719_p8 = pneg %p1718_p7 }
 0x8e0   : > { %p1724_p12 = pnand %p1723_p11, %p1719_p8 }
 0x8e2   : > { %1727 = shalt.err (!%p1724_p12)
}
 0x8e3   : > { %1584 = dma.vmem_to_hbm [thread:$0]  (%p1909_p5), %s2114_s22, 16, %s2112_s4, %s1387_s2   ;;  %v1583_v44 = vpop.f32.mrf.mxu0 }
 0x8e4 PF: > { %p1590_p13 = scmp.ge.s32.totalorder %s1762_s21, 2  ;;  %s1411_s5 = sand.u32 1, %s1750_s0  }
 0x8e5   : > { %s1412_s6 = scalar_lea.sflag [#allocation4], %s1411_s5 }
 0x8e6   : > { %p1587_p0 = pnand %p1590_p13, %p1913_p6 }
 0x8e8   : > { %p1588_p1 = pneg %p1587_p0 }
 0x8ea   : > { %1745 = dma.done.wait (%p1588_p1), %s1412_s6, 16  }
 0x8eb   : > { %1747 = vsyncadd (%p1588_p1), %s1412_s6, 4294967280  ;;  %s2196_s21 = sld [smem:[#allocation7_spill]]  ;;  %s2199_s0 = smov %s1754_s30 }
 0x8ec   : > { %s2197_s28 = sld [smem:[#allocation6_spill]] }
 0x8ed   : > { %s2198_s20 = sld [smem:[#allocation8_spill]] }
 0x8f1   : > { %p29_p2 = scmp.ge.s32.totalorder %s2196_s21, 4  }
 0x8f2   : > { %s2200_s30 = smov %s2197_s28 }
 0x8f3   :  { %31 = sbr.rel (!%p29_p2) target bundleno = 11 (0xb), region = 131 }
 0x8f8   :  { %1416 = vsyncpa [#allocation4], 1 }
 0x8f9   :  { %1418 = vsyncpa [#allocation4 + $0x1], 1 }

</bundles_post_ra>
